<compile_context>
chip_gen: v5e
topology: v5e:2x2
jax: 0.10.0
libtpu: 0.0.40
codegen_flags: <defaults>
</compile_context>

<pallas_src>
import jax
import jax.numpy as jnp
from jax import lax
from jax.experimental import pallas as pl
from jax.experimental.pallas import tpu as pltpu

_OUT_ROWS = 8    # sublane-padded logit rows in the transposed output (true = 2)
_LANE = 128      # lane alignment for the transposed output tile


def _round_up(x, m):
    return ((x + m - 1) // m) * m


def _discriminator_kernel(z_ref, w1_ref, b1_ref, w2t_ref, b2t_ref, o_ref):
    z = z_ref[...]                                                  # (tb, D)
    # Layer 1: MXU matmul with f32 accumulation (bf16 or f32 inputs).
    h = jnp.dot(z, w1_ref[...], preferred_element_type=jnp.float32)  # (tb, 32)
    h = h + b1_ref[...]                                             # (1, 32) bcast
    # LeakyReLU(0.2)
    h = jnp.where(h > 0, h, 0.2 * h)
    # Layer 2, computed transposed: (8, 32) . (tb, 32)^T -> (8, tb).
    # Contracting the last dims of both operands (q.k^T pattern) keeps the
    # output lane-dense without materializing an explicit transpose.
    out_t = lax.dot_general(
        w2t_ref[...], h,
        dimension_numbers=(((1,), (1,)), ((), ())),
        preferred_element_type=jnp.float32)                         # (8, tb)
    o_ref[...] = (out_t + b2t_ref[...]).astype(o_ref.dtype)         # (8, 1) bcast


def discriminator_forward(z, w1, b1, w2, b2, *, block_rows=8192, use_bf16=True):
    """z: (B, latent_dim); w1: (latent_dim, 32); b1: (1, 32);
       w2: (32, 2); b2: (1, 2)  ->  (B, 2) logits (float32)."""
    B, D = z.shape
    hidden = w1.shape[1]                  # 32
    n_out = w2.shape[1]                   # 2

    # Transposed, sublane-padded layer-2 params: (8, 32) weights, (8, 1) bias.
    w2t = jnp.zeros((_OUT_ROWS, hidden), jnp.float32).at[:n_out, :].set(
        w2.astype(jnp.float32).T)
    b2t = jnp.zeros((_OUT_ROWS, 1), jnp.float32).at[:n_out, :].set(
        b2.astype(jnp.float32).T)
    b1 = b1.astype(jnp.float32)

    # bf16 streaming path for the HBM-dominant input read.
    if use_bf16:
        z = z.astype(jnp.bfloat16)
        w1 = w1.astype(jnp.bfloat16)

    # Batch tile: lane-aligned (multiple of 128 -> also fine for bf16 packing),
    # ~B/2 for medium batches so the grid has >=2 steps (v7x dual-TC), capped
    # at block_rows. No wrapper padding: Pallas handles the ragged last block.
    if B <= _LANE:
        tb = B                                  # single full-extent block
    else:
        tb = min(block_rows, _round_up(pl.cdiv(B, 2), _LANE))
    grid = (pl.cdiv(B, tb),)

    in_bytes = B * D * z.dtype.itemsize
    out_bytes = B * _OUT_ROWS * 4
    cost = pl.CostEstimate(
        flops=2 * B * (D * hidden + hidden * _OUT_ROWS),
        transcendentals=0,
        bytes_accessed=in_bytes + out_bytes + (D + _OUT_ROWS) * hidden * 4)

    out_t = pl.pallas_call(
        _discriminator_kernel,
        out_shape=jax.ShapeDtypeStruct((_OUT_ROWS, B), jnp.float32),
        grid_spec=pltpu.PrefetchScalarGridSpec(
            num_scalar_prefetch=0,
            grid=grid,
            in_specs=[
                # Streamed, double-buffered batch tiles of z.
                pl.BlockSpec((tb, D), lambda i: (i, 0)),
                # Weights / biases: constant index_map -> resident across grid.
                pl.BlockSpec((D, hidden), lambda i: (0, 0)),
                pl.BlockSpec((1, hidden), lambda i: (0, 0)),
                pl.BlockSpec((_OUT_ROWS, hidden), lambda i: (0, 0)),
                pl.BlockSpec((_OUT_ROWS, 1), lambda i: (0, 0)),
            ],
            # Transposed, lane-dense output tiles.
            out_specs=pl.BlockSpec((_OUT_ROWS, tb), lambda i: (0, i)),
        ),
        compiler_params=pltpu.CompilerParams(
            # Batch tiles are independent -> shard across v7x's 2 TensorCores.
            dimension_semantics=("parallel",),
        ),
        cost_estimate=cost,
    )(z, w1, b1, w2t, b2t)

    # Un-transpose the two valid logit rows -> (B, 2).
    return out_t[:n_out, :].T


def init_params(latent_dim, key):
    """Deterministic synthetic parameters matching nn.Linear shapes.
    PyTorch stores weight as (out, in); we keep the transposed (in, out)."""
    k1, k2, k3, k4 = jax.random.split(key, 4)
    lim1 = 1.0 / jnp.sqrt(latent_dim)
    lim2 = 1.0 / jnp.sqrt(32.0)
    w1 = jax.random.uniform(k1, (latent_dim, 32), jnp.float32, -lim1, lim1)
    b1 = jax.random.uniform(k2, (1, 32), jnp.float32, -lim1, lim1)
    w2 = jax.random.uniform(k3, (32, 2), jnp.float32, -lim2, lim2)
    b2 = jax.random.uniform(k4, (1, 2), jnp.float32, -lim2, lim2)
    return w1, b1, w2, b2


def reference_forward(z, w1, b1, w2, b2):
    h = z @ w1 + b1
    h = jnp.where(h > 0, h, 0.2 * h)
    return h @ w2 + b2


if __name__ == "__main__":
    key = jax.random.PRNGKey(0)
    kz, kp, kz2 = jax.random.split(key, 3)

    latent_dim = 16
    w1, b1, w2, b2 = init_params(latent_dim, kp)

    # 1) Small batch, f32 path (single full-extent block) -> tight tolerance.
    batch = 8
    z = jax.random.normal(kz, (batch, latent_dim), jnp.float32)
    out = jax.block_until_ready(
        discriminator_forward(z, w1, b1, w2, b2, use_bf16=False))
    ref = reference_forward(z, w1, b1, w2, b2)
    assert out.shape == (batch, 2)
    assert jnp.allclose(out, ref, atol=1e-5, rtol=1e-5)

    # 2) Larger, non-multiple-of-tile batch, default bf16 streaming path
    #    (2 grid steps + ragged last block). Compare against a reference that
    #    uses the same bf16-rounded inputs.
    batch2 = 2053
    z2 = jax.random.normal(kz2, (batch2, latent_dim), jnp.float32)
    out2 = jax.block_until_ready(discriminator_forward(z2, w1, b1, w2, b2))
    ref2 = reference_forward(
        z2.astype(jnp.bfloat16).astype(jnp.float32),
        w1.astype(jnp.bfloat16).astype(jnp.float32), b1, w2, b2)
    assert out2.shape == (batch2, 2)
    assert jnp.allclose(out2, ref2, atol=2e-3, rtol=2e-3)

    print("KERNEL_OK")
</pallas_src>

<mosaic_0001>
module attributes {stable_mosaic.version = 11 : i64} {
  func.func @_discriminator_kernel(%arg0: i32, %arg1: memref<8x16xf32, #tpu.memory_space<vmem>>, %arg2: memref<16x32xf32, #tpu.memory_space<vmem>>, %arg3: memref<1x32xf32, #tpu.memory_space<vmem>>, %arg4: memref<8x32xf32, #tpu.memory_space<vmem>>, %arg5: memref<8x1xf32, #tpu.memory_space<vmem>>, %arg6: memref<8x8xf32, #tpu.memory_space<vmem>>) attributes {dimension_semantics = [#tpu.dimension_semantics<parallel>], iteration_bounds = array<i64: 1>, scalar_prefetch = 0 : i64, scratch_operands = 0 : i64, tpu.core_type = #tpu.core_type<tc>, window_params = [{transform_indices = @transform_0, window_bounds = array<i64: 8, 16>}, {pipeline_mode = #tpu.pipeline_mode<synchronous>, transform_indices = @transform_1, window_bounds = array<i64: 16, 32>}, {pipeline_mode = #tpu.pipeline_mode<synchronous>, transform_indices = @transform_2, window_bounds = array<i64: 1, 32>}, {pipeline_mode = #tpu.pipeline_mode<synchronous>, transform_indices = @transform_3, window_bounds = array<i64: 8, 32>}, {pipeline_mode = #tpu.pipeline_mode<synchronous>, transform_indices = @transform_4, window_bounds = array<i64: 8, 1>}, {transform_indices = @transform_5, window_bounds = array<i64: 8, 8>}]} {
    %c0 = arith.constant 0 : index
    %c0_0 = arith.constant 0 : index
    %0 = vector.load %arg1[%c0, %c0_0] : memref<8x16xf32, #tpu.memory_space<vmem>>, vector<8x16xf32>
    %c0_1 = arith.constant 0 : index
    %c0_2 = arith.constant 0 : index
    %1 = vector.load %arg2[%c0_1, %c0_2] : memref<16x32xf32, #tpu.memory_space<vmem>>, vector<16x32xf32>
    %cst = arith.constant dense<0.000000e+00> : vector<8x32xf32>
    %2 = tpu.matmul %0, %1, %cst {dimension_numbers = #tpu.dot_dimension_numbers<[1], [0], [0], [1], [0, 0, 1, 1], [], []>} : vector<8x16xf32>, vector<16x32xf32>, vector<8x32xf32> -> vector<8x32xf32>
    %c0_3 = arith.constant 0 : index
    %c0_4 = arith.constant 0 : index
    %3 = vector.load %arg3[%c0_3, %c0_4] : memref<1x32xf32, #tpu.memory_space<vmem>>, vector<1x32xf32>
    %4 = vector.broadcast %3 : vector<1x32xf32> to vector<8x32xf32>
    %5 = arith.addf %2, %4 : vector<8x32xf32>
    %cst_5 = arith.constant 0.000000e+00 : f32
    %6 = vector.broadcast %cst_5 : f32 to vector<8x32xf32>
    %7 = arith.cmpf ogt, %5, %6 : vector<8x32xf32>
    %cst_6 = arith.constant 2.000000e-01 : f32
    %8 = vector.broadcast %cst_6 : f32 to vector<8x32xf32>
    %9 = arith.mulf %8, %5 : vector<8x32xf32>
    %10 = arith.select %7, %5, %9 : vector<8x32xi1>, vector<8x32xf32>
    %c0_7 = arith.constant 0 : index
    %c0_8 = arith.constant 0 : index
    %11 = vector.load %arg4[%c0_7, %c0_8] : memref<8x32xf32, #tpu.memory_space<vmem>>, vector<8x32xf32>
    %cst_9 = arith.constant dense<0.000000e+00> : vector<8x8xf32>
    %12 = tpu.matmul %11, %10, %cst_9 {dimension_numbers = #tpu.dot_dimension_numbers<[1], [1], [0], [0], [0, 0, 1, 0], [], []>} : vector<8x32xf32>, vector<8x32xf32>, vector<8x8xf32> -> vector<8x8xf32>
    %c0_10 = arith.constant 0 : index
    %c0_11 = arith.constant 0 : index
    %13 = vector.load %arg5[%c0_10, %c0_11] : memref<8x1xf32, #tpu.memory_space<vmem>>, vector<8x1xf32>
    %14 = vector.broadcast %13 : vector<8x1xf32> to vector<8x8xf32>
    %15 = arith.addf %12, %14 : vector<8x8xf32>
    %c0_12 = arith.constant 0 : index
    %c0_13 = arith.constant 0 : index
    %16 = vector.load %arg6[%c0_12, %c0_13] : memref<8x8xf32, #tpu.memory_space<vmem>>, vector<8x8xf32>
    tpu.vector_store %arg6[%c0_12, %c0_13], %15 {strides = array<i32>} : memref<8x8xf32, #tpu.memory_space<vmem>>, vector<8x8xf32>,
    return
  }
  func.func @transform_0(%arg0: i32) -> (i32, i32) {
    %c0_i32 = arith.constant 0 : i32
    %c0_i32_0 = arith.constant 0 : i32
    return %arg0, %c0_i32 : i32, i32
  }
  func.func @transform_1(%arg0: i32) -> (i32, i32) {
    %c0_i32 = arith.constant 0 : i32
    %c0_i32_0 = arith.constant 0 : i32
    %c0_i32_1 = arith.constant 0 : i32
    return %c0_i32, %c0_i32_0 : i32, i32
  }
  func.func @transform_2(%arg0: i32) -> (i32, i32) {
    %c0_i32 = arith.constant 0 : i32
    %c0_i32_0 = arith.constant 0 : i32
    %c0_i32_1 = arith.constant 0 : i32
    return %c0_i32, %c0_i32_0 : i32, i32
  }
  func.func @transform_3(%arg0: i32) -> (i32, i32) {
    %c0_i32 = arith.constant 0 : i32
    %c0_i32_0 = arith.constant 0 : i32
    %c0_i32_1 = arith.constant 0 : i32
    return %c0_i32, %c0_i32_0 : i32, i32
  }
  func.func @transform_4(%arg0: i32) -> (i32, i32) {
    %c0_i32 = arith.constant 0 : i32
    %c0_i32_0 = arith.constant 0 : i32
    %c0_i32_1 = arith.constant 0 : i32
    return %c0_i32, %c0_i32_0 : i32, i32
  }
  func.func @transform_5(%arg0: i32) -> (i32, i32) {
    %c0_i32 = arith.constant 0 : i32
    %c0_i32_0 = arith.constant 0 : i32
    return %c0_i32, %arg0 : i32, i32
  }
}

</mosaic_0001>

<bundles_post_ra>
// kernel: tpu_custom_call.1
= control target key start
LH: loop header
LB: loop body
LE: loop exit
PB: predicated region body
PF: predicated region fallthrough
CT: control target
= control target key end

     0   :  { %10 = vsyncpa [#allocation3], 0  ;;  %s282_s0 = inlined_call_operand.vmem [shape: f32[8,16], index: 0, kind: input, shape index: {}]   ;;  %s283_s1 = inlined_call_operand.hbm [shape: f32[16,32], index: 1, kind: input, shape index: {}]   ;;  %s284_s2 = inlined_call_operand.vmem [shape: f32[1,32], index: 2, kind: input, shape index: {}]   ;;  %s285_s3 = inlined_call_operand.hbm [shape: f32[8,32], index: 3, kind: input, shape index: {}]   ;;  %s286_s4 = inlined_call_operand.vmem [shape: f32[8,1], index: 4, kind: input, shape index: {}]   ;;  %s287_s5 = inlined_call_operand.hbm [shape: f32[8,8], index: 5, kind: output, shape index: {}]  }
   0x1   :  { %11 = vsyncpa [#allocation6], 0 }
   0x2   :  { %12 = vsyncpa [#allocation4], 0  ;;  %s19_s20 = sshll.u32 %s283_s1, 4  ;;  %s228_s21 = smov [#allocation2]   ;;  %s20_s20 = int_to_ptr.hbm [resolvable:$true] %s19_s20 }
   0x3   :  { %s21_s22 = sshll.u32 %s228_s21, 4  ;;  %s35_s25 = sshll.u32 %s285_s3, 4  ;;  %s22_s22 = int_to_ptr.vmem [resolvable:$true] %s21_s22  ;;  %s36_s25 = int_to_ptr.hbm [resolvable:$true] %s35_s25 }
   0x4   :  { %s229_s26 = smov 128   ;;  %s230_s27 = smov 8  }
   0x5   :  { %27 = dma.hbm_to_vmem [thread:$0]  %s20_s20, 256, %s22_s22, [#allocation3], %s229_s26, %s229_s26, %s230_s27  }
   0x6   :  { %s231_s28 = smov [#allocation5]  }
   0x7   :  { %s37_s29 = sshll.u32 %s231_s28, 4  ;;  %s38_s29 = int_to_ptr.vmem [resolvable:$true] %s37_s29 }
   0x8   :  { %40 = dma.hbm_to_vmem [thread:$0]  %s36_s25, 128, %s38_s29, [#allocation6]  }
   0x9   :  { %222 = dma.done.wait [#allocation3], 256  }
   0xa   :  { %223 = vsyncadd [#allocation3], 4294967040 }
   0xb   :  { %224 = dma.done.wait [#allocation6], 128  }
   0xc   :  { %225 = vsyncadd [#allocation6], 4294967168  ;;  %v53_v0 = vld [vmem:[#allocation2 + $0x8] sm:$0xff]  ;;  %v52_v1 = vld [vmem:[#allocation2] sm:$0xff]  ;;  %vm58_vm0 = vcmask 130048   ;;  %v232_v4 = vmov 0  }
   0xd   :  { %76 = vmatpush.msra.mxu0 %v53_v0  ;;  %v51_v2 = vld [vmem:[%s282_s0] sm:$0xff]  ;;  %148 = vset.pattern.permute.xlu0 %v232_v4  ;;  %vm92_vm2 = vcmask 261120   ;;  %v85_v10 = vld [vmem:[#allocation5] sm:$0xff]  ;;  %s233_s0 = smov [#allocation7]   ;;  %s128_s11 = sshll.u32 %s287_s5, 4  ;;  %vm119_vm3 = vcmask 64512   ;;  %s129_s11 = int_to_ptr.hbm [resolvable:$true] %s128_s11 }
   0xe   :  { %v86_v3 = vld [vmem:[%s286_s4] sm:$0xff]  ;;  %s126_s9 = sshll.u32 %s233_s0, 4  ;;  %s127_s9 = int_to_ptr.vmem [resolvable:$true] %s126_s9 }
   0xf   :  { %77 = vmatpush.msra.mxu0 %v52_v1  ;;  %89 = vperm.xlu0 %148, %v86_v3   ;;  %v149_v5 = vld [vmem:[%s284_s2] ss:$0 sm:$0xff] }
  0x10   :  { %139 = vmatmul.msk.f32.vlgmr.msra.gmra.mxu0 %vm58_vm0, %v51_v2 }
  0x81   :  { %v90_v11 = vpop.permute.xlu0 %89 }
  0x8d   :  { %v79_v6 = vpop.f32.mrf.mxu0 }
  0x8e   :  { %v80_v7 = vadd.f32 %v149_v5, %v79_v6 }
  0x90   :  { %vm82_vm1 = vcmp.gt.f32.partialorder %v80_v7, 0.0  ;;  %v83_v8 = vmul.f32 0.2, %v80_v7 }
  0x92   :  { %v84_v9 = vsel %vm82_vm1, %v80_v7, %v83_v8 }
  0x93   :  { %140 = vmatpush.xpose.msk.msra.mxu1 %vm92_vm2, %v84_v9 }
  0x96   :  { %141 = vmatmul.msk.f32.vlgmr.msra.gmra.mxu1 %vm92_vm2, %v85_v10 }
 0x113   :  { %v116_v12 = vpop.f32.mrf.mxu1 }
 0x114   :  { %v117_v13 = vadd.f32 %v116_v12, %v90_v11 }
 0x116   :  { %120 = vst.msk [vmem:[#allocation7] sm:$0xff] %vm119_vm3, %v117_v13 }
 0x117   :  { %131 = dma.vmem_to_hbm [thread:$0]  %s127_s9, 128, %s129_s11, [#allocation4]  }
 0x118   :  { %226 = dma.done.wait [#allocation4], 128  }
 0x119   :  { %227 = vsyncadd [#allocation4], 4294967168 }
 0x11a   :  { %136 = vsyncpa [#allocation3], 1 }
 0x11b   :  { %137 = vsyncpa [#allocation6], 1 }
 0x11c   :  { %138 = vsyncpa [#allocation4], 1 }

</bundles_post_ra>
